<compile_context>
chip_gen: v7x
topology: tpu7x:2x2x1
jax: 0.10.0
libtpu: 0.0.40
codegen_flags: <defaults>
</compile_context>

<pallas_src>
import functools
import math

import jax
import jax.numpy as jnp
from jax.experimental import pallas as pl
from jax.experimental.pallas import tpu as pltpu


def _round_up(a: int, b: int) -> int:
    return -(-a // b) * b


def _cdiv(a: int, b: int) -> int:
    return -(-a // b)


# Per-buffer VMEM budget for the double-buffered input stream (6 MiB total),
# chosen to fit every TPU generation's *default* scoped-VMEM limit with margin.
_INPUT_BUFFER_BYTES = 3 * 1024 * 1024


def _pick_tile(total_rows: int, vmem_bytes_per_row: int) -> int:
    """Row tile: multiple of 8 (or the full extent for tiny inputs), within the
    VMEM budget, and small enough that the 'parallel' row grid has >= 2 tiles
    whenever there is enough work (keeps both v7x TensorCores busy)."""
    tile_max = max(8, (_INPUT_BUFFER_BYTES // max(1, vmem_bytes_per_row)) // 8 * 8)
    if total_rows <= tile_max:
        if total_rows >= 16:
            # Two balanced tiles so a "parallel" grid can use 2 TensorCores.
            return _round_up(_cdiv(total_rows, 2), 8)
        return total_rows          # single block == full array (no 8-row constraint)
    return tile_max


def _packed_kernel(x_ref, seg_ref, o_ref, *, inv_tf: float):
    # x_ref : (tile_g, P*TF) lane-dense block, native dtype (bf16/f32/...).
    # seg_ref: (P*TF, P) constant block-diagonal ones (segment-sum matrix).
    # o_ref : (tile_g, P) float32; o[g, p] = mean over row g*P+p's T*F elements.
    xf = x_ref[...].astype(jnp.float32)            # in-vreg cast (free VPU slot)
    sq = xf * xf
    # Segmented per-original-row sum on the otherwise idle MXU.
    o_ref[...] = jnp.dot(sq, seg_ref[...],
                         preferred_element_type=jnp.float32) * jnp.float32(inv_tf)


def _rowwise_kernel(x_ref, o_ref, *, inv_tf: float):
    # Fallback (generic shapes): x_ref (tile_rows, TF) -> o_ref (tile_rows, 1).
    xf = x_ref[...].astype(jnp.float32)
    sq = xf * xf
    o_ref[...] = jnp.sum(sq, axis=-1, keepdims=True) * jnp.float32(inv_tf)


def guidance_loss_pallas(x, agt_mask=None):
    """x: (B, N, T, F) array (any float dtype); agt_mask: optional (B,) bool.

    Returns (B, N) float32 per-sample guidance loss (placeholder quadratic).
    """
    B, N, T, F = x.shape
    TF = T * F
    R = B * N
    itemsize = jnp.dtype(x.dtype).itemsize
    inv_tf = 1.0 / TF

    # Smallest packing factor P (multiple of 8) making P*TF a multiple of 128
    # lanes.  For the canonical TF = 48 this is P = 8 (width 384 = 3*128).
    lane_pack = max(8, 128 // math.gcd(TF, 128))
    use_packed = (R % lane_pack == 0)

    if use_packed:
        G = R // lane_pack
        packed_width = lane_pack * TF
        x_grp = x.reshape(G, packed_width)      # copy-free, lane-dense rows
        # Constant block-diagonal segment-sum matrix (tiny: P*TF x P floats).
        seg = (jnp.arange(packed_width)[:, None] // TF
               == jnp.arange(lane_pack)[None, :]).astype(jnp.float32)

        tile_g = _pick_tile(G, packed_width * itemsize)
        grid = (_cdiv(G, tile_g),)              # no padding; last block partial
        kernel = functools.partial(_packed_kernel, inv_tf=inv_tf)
        out = pl.pallas_call(
            kernel,
            out_shape=jax.ShapeDtypeStruct((G, lane_pack), jnp.float32),
            grid=grid,
            in_specs=[
                pl.BlockSpec((tile_g, packed_width), lambda i: (i, 0)),
                pl.BlockSpec((packed_width, lane_pack), lambda i: (0, 0)),
            ],
            out_specs=pl.BlockSpec((tile_g, lane_pack), lambda i: (i, 0)),
            compiler_params=pltpu.CompilerParams(
                dimension_semantics=("parallel",)),
        )(x_grp, seg)
        loss = out.reshape(B, N)
    else:
        # Generic fallback: (R, TF) rows, lane-padded blocks, still no jnp.pad.
        x_flat = x.reshape(R, TF)
        tile_rows = _pick_tile(R, _round_up(TF, 128) * itemsize)
        grid = (_cdiv(R, tile_rows),)           # last block partial, writes masked
        kernel = functools.partial(_rowwise_kernel, inv_tf=inv_tf)
        out = pl.pallas_call(
            kernel,
            out_shape=jax.ShapeDtypeStruct((R, 1), jnp.float32),
            grid=grid,
            in_specs=[pl.BlockSpec((tile_rows, TF), lambda i: (i, 0))],
            out_specs=pl.BlockSpec((tile_rows, 1), lambda i: (i, 0)),
            compiler_params=pltpu.CompilerParams(
                dimension_semantics=("parallel",)),
        )(x_flat)
        loss = out.reshape(B, N)

    if agt_mask is not None:
        # Zero out non-guided agents on the tiny (B, N) output in XLA.
        # TODO(synk): concrete tbsim losses often *select* agents
        # (x = x[agt_mask]), which also removes them from the final mean's
        # denominator; here masked rows are kept (as zeros) to preserve the
        # (B, N) output contract of the abstract base class.
        loss = loss * jnp.asarray(agt_mask, jnp.float32)[:, None]
    return loss


class GuidanceLoss:
    """JAX/Pallas mirror of tbsim GuidanceLoss (abstract guidance loss base)."""

    def __init__(self):
        self.global_t = 0
        # No learnable parameters in the reference __init__.

    def init_for_batch(self, example_batch):
        pass

    def update(self, global_t=None):
        if global_t is not None:
            self.global_t = global_t

    def forward(self, x, data_batch=None, agt_mask=None):
        # Returns (B, N) loss per sample of each batch index.
        return guidance_loss_pallas(x, agt_mask)

    __call__ = forward


def _reference(x, agt_mask=None):
    B, N, T, F = x.shape
    ref = jnp.mean(jnp.asarray(x, jnp.float32).reshape(B, N, T * F) ** 2, axis=-1)
    if agt_mask is not None:
        ref = ref * jnp.asarray(agt_mask, jnp.float32)[:, None]
    return ref


if __name__ == "__main__":
    key = jax.random.PRNGKey(0)
    k1, k2, k3 = jax.random.split(key, 3)

    # Case 1: canonical small shape -> packed lane-dense path, f32, agt_mask.
    B, N, T, F = 2, 4, 8, 6
    x = jax.random.normal(k1, (B, N, T, F), dtype=jnp.float32)
    agt_mask = jnp.array([True, False])

    loss_fn = GuidanceLoss()
    loss_fn.init_for_batch(None)
    loss_fn.update(global_t=3)

    loss = jax.block_until_ready(loss_fn(x, data_batch=None, agt_mask=agt_mask))
    assert loss.shape == (B, N)
    assert jnp.allclose(loss, _reference(x, agt_mask), atol=1e-5, rtol=1e-5)

    # Case 2: rows not a multiple of the packing factor -> row-wise fallback,
    # multi-tile grid with a partial (masked) last block, bf16 in-kernel cast.
    B2, N2 = 2, 13                       # R = 26 -> two 16-row tiles, no pad copy
    x2 = jax.random.normal(k2, (B2, N2, T, F), dtype=jnp.bfloat16)
    loss2 = jax.block_until_ready(guidance_loss_pallas(x2, agt_mask=None))
    assert loss2.shape == (B2, N2)
    assert jnp.allclose(loss2, _reference(x2), atol=1e-4, rtol=1e-4)

    # Case 3: packed lane-dense path with a multi-tile "parallel" grid, bf16.
    B3, N3 = 4, 64                       # R = 256 -> G = 32 group rows, 2 tiles
    x3 = jax.random.normal(k3, (B3, N3, T, F), dtype=jnp.bfloat16)
    loss3 = jax.block_until_ready(guidance_loss_pallas(x3, agt_mask=None))
    assert loss3.shape == (B3, N3)
    assert jnp.allclose(loss3, _reference(x3), atol=1e-4, rtol=1e-4)

    # Final scalar guidance loss (mean over B, N), as documented by the module.
    final = jax.block_until_ready(jnp.mean(loss))
    _ = final
    print("KERNEL_OK")
</pallas_src>

<mosaic_0001>
module attributes {stable_mosaic.version = 11 : i64} {
  func.func @_packed_kernel(%arg0: i32, %arg1: memref<1x384xf32, #tpu.memory_space<vmem>>, %arg2: memref<384x8xf32, #tpu.memory_space<vmem>>, %arg3: memref<1x8xf32, #tpu.memory_space<vmem>>) attributes {dimension_semantics = [#tpu.dimension_semantics<parallel>], iteration_bounds = array<i64: 1>, scalar_prefetch = 0 : i64, scratch_operands = 0 : i64, tpu.core_type = #tpu.core_type<tc>, window_params = [{transform_indices = @transform_0, window_bounds = array<i64: 1, 384>}, {pipeline_mode = #tpu.pipeline_mode<synchronous>, transform_indices = @transform_1, window_bounds = array<i64: 384, 8>}, {transform_indices = @transform_2, window_bounds = array<i64: 1, 8>}]} {
    %c0 = arith.constant 0 : index
    %c0_0 = arith.constant 0 : index
    %0 = vector.load %arg1[%c0, %c0_0] : memref<1x384xf32, #tpu.memory_space<vmem>>, vector<1x384xf32>
    %1 = arith.mulf %0, %0 : vector<1x384xf32>
    %c0_1 = arith.constant 0 : index
    %c0_2 = arith.constant 0 : index
    %2 = vector.load %arg2[%c0_1, %c0_2] : memref<384x8xf32, #tpu.memory_space<vmem>>, vector<384x8xf32>
    %cst = arith.constant dense<0.000000e+00> : vector<1x8xf32>
    %3 = tpu.matmul %1, %2, %cst {dimension_numbers = #tpu.dot_dimension_numbers<[1], [0], [0], [1], [0, 0, 1, 1], [], []>} : vector<1x384xf32>, vector<384x8xf32>, vector<1x8xf32> -> vector<1x8xf32>
    %cst_3 = arith.constant 0.020833334 : f32
    %4 = vector.broadcast %cst_3 : f32 to vector<1x8xf32>
    %5 = arith.mulf %3, %4 : vector<1x8xf32>
    %c0_4 = arith.constant 0 : index
    %c0_5 = arith.constant 0 : index
    %6 = vector.load %arg3[%c0_4, %c0_5] : memref<1x8xf32, #tpu.memory_space<vmem>>, vector<1x8xf32>
    tpu.vector_store %arg3[%c0_4, %c0_5], %5 {strides = array<i32>} : memref<1x8xf32, #tpu.memory_space<vmem>>, vector<1x8xf32>,
    return
  }
  func.func @transform_0(%arg0: i32) -> (i32, i32) {
    %c0_i32 = arith.constant 0 : i32
    %c0_i32_0 = arith.constant 0 : i32
    return %arg0, %c0_i32 : i32, i32
  }
  func.func @transform_1(%arg0: i32) -> (i32, i32) {
    %c0_i32 = arith.constant 0 : i32
    %c0_i32_0 = arith.constant 0 : i32
    %c0_i32_1 = arith.constant 0 : i32
    return %c0_i32, %c0_i32_0 : i32, i32
  }
  func.func @transform_2(%arg0: i32) -> (i32, i32) {
    %c0_i32 = arith.constant 0 : i32
    %c0_i32_0 = arith.constant 0 : i32
    return %arg0, %c0_i32 : i32, i32
  }
}

</mosaic_0001>

<bundles_post_ra>
// kernel: tpu_custom_call.1
= control target key start
LH: loop header
LB: loop body
LE: loop exit
PB: predicated region body
PF: predicated region fallthrough
CT: control target
= control target key end

     0   :  { %v406_v5 = vmov 0.0|0.0   ;;  %vm407_vm0 = vmmov 0   ;;  %v408_v8 = vmov 0.0   ;;  %v63_v29 = vlaneseq  ;;  %s597_s0 = inlined_call_operand.vmem [shape: f32[1,384], index: 0, kind: input, shape index: {}]   ;;  %s598_s1 = inlined_call_operand.vmem [shape: f32[384,8], index: 1, kind: input, shape index: {}]   ;;  %s599_s2 = inlined_call_operand.hbm [shape: f32[1,8], index: 2, kind: output, shape index: {}]  }
   0x1   :  { %v30_v0 = vld [vmem:[%s598_s1 + $0x80] sm:$0xff]  ;;  %v31_v1 = vld [vmem:[%s598_s1 + $0x88] sm:$0xff]  ;;  %354 = vmatprep.subr.bf16.mxu1 %v406_v5  ;;  %319 = vmatprep.mubr.msk.f32.mxu1 %vm407_vm0, %v408_v8  ;;  %v32_v11 = vld [vmem:[%s598_s1 + $0x90] sm:$0xff] }
   0x2   :  { %v14_v2 = vld [vmem:[%s598_s1] sm:$0xff]  ;;  %v322_v3 = vpack.c.bf16 %v31_v1, %v30_v0  ;;  %v15_v4 = vld [vmem:[%s598_s1 + $0x8] sm:$0xff]  ;;  %v33_v12 = vld [vmem:[%s598_s1 + $0x98] sm:$0xff]  ;;  %v506_v39 = vshrl.u32 %v63_v29, 7 }
   0x3   :  { %v46_v6 = vld [vmem:[%s598_s1 + $0x100] sm:$0xff]  ;;  %v47_v7 = vld [vmem:[%s598_s1 + $0x108] sm:$0xff]  ;;  %v324_v9 = vpack.c.bf16 %v15_v4, %v14_v2  ;;  %v16_v13 = vld [vmem:[%s598_s1 + $0x10] sm:$0xff]  ;;  %v326_v14 = vpack.c.bf16 %v33_v12, %v32_v11 }
   0x4   :  { %v355_v10 = vpack.c.bf16 %v47_v7, %v46_v6  ;;  %323 = vmatprep.subr.bf16.mxu0 %v322_v3  ;;  %v17_v15 = vld [vmem:[%s598_s1 + $0x18] sm:$0xff]  ;;  %v48_v16 = vld [vmem:[%s598_s1 + $0x110] sm:$0xff]  ;;  %v34_v20 = vld [vmem:[%s598_s1 + $0xa0] sm:$0xff]  ;;  %v69_v49 = vsub.s32 1, %v506_v39 }
   0x5   :  { %v49_v17 = vld [vmem:[%s598_s1 + $0x118] sm:$0xff]  ;;  %325 = vmatpush3.bf16.msra.mxu0 %v324_v9  ;;  %v328_v18 = vpack.c.bf16 %v17_v15, %v16_v13  ;;  %v35_v21 = vld [vmem:[%s598_s1 + $0xa8] sm:$0xff]  ;;  %v18_v22 = vld [vmem:[%s598_s1 + $0x20] sm:$0xff] }
   0x6   :  { %356 = vmatpush3.bf16.msra.mxu1 %v355_v10  ;;  %v358_v19 = vpack.c.bf16 %v49_v17, %v48_v16  ;;  %327 = vmatprep.subr.bf16.mxu0 %v326_v14  ;;  %v330_v23 = vpack.c.bf16 %v35_v21, %v34_v20  ;;  %v19_v24 = vld [vmem:[%s598_s1 + $0x28] sm:$0xff]  ;;  %v50_v25 = vld [vmem:[%s598_s1 + $0x120] sm:$0xff]  ;;  %v36_v27 = vld [vmem:[%s598_s1 + $0xb0] sm:$0xff] }
   0x7   :  { %357 = vmatprep.subr.bf16.mxu1 %v406_v5  ;;  %v51_v26 = vld [vmem:[%s598_s1 + $0x128] sm:$0xff]  ;;  %v37_v28 = vld [vmem:[%s598_s1 + $0xb8] sm:$0xff]  ;;  %v332_v30 = vpack.c.bf16 %v19_v24, %v18_v22  ;;  %v20_v32 = vld [vmem:[%s598_s1 + $0x30] sm:$0xff] }
   0x8   :  { %v361_v31 = vpack.c.bf16 %v51_v26, %v50_v25  ;;  %v334_v33 = vpack.c.bf16 %v37_v28, %v36_v27  ;;  %v21_v34 = vld [vmem:[%s598_s1 + $0x38] sm:$0xff]  ;;  %v52_v35 = vld [vmem:[%s598_s1 + $0x130] sm:$0xff]  ;;  %v38_v37 = vld [vmem:[%s598_s1 + $0xc0] sm:$0xff] }
   0x9   :  { %329 = vmatpush3.bf16.msra.mxu0 %v328_v18  ;;  %v53_v36 = vld [vmem:[%s598_s1 + $0x138] sm:$0xff]  ;;  %v39_v38 = vld [vmem:[%s598_s1 + $0xc8] sm:$0xff]  ;;  %v336_v40 = vpack.c.bf16 %v21_v34, %v20_v32  ;;  %v22_v42 = vld [vmem:[%s598_s1 + $0x40] sm:$0xff] }
   0xa   :  { %359 = vmatpush3.bf16.msra.mxu1 %v358_v19  ;;  %331 = vmatprep.subr.bf16.mxu0 %v330_v23  ;;  %v364_v41 = vpack.c.bf16 %v53_v36, %v52_v35  ;;  %v338_v43 = vpack.c.bf16 %v39_v38, %v38_v37  ;;  %v23_v44 = vld [vmem:[%s598_s1 + $0x48] sm:$0xff]  ;;  %v54_v45 = vld [vmem:[%s598_s1 + $0x140] sm:$0xff]  ;;  %v40_v47 = vld [vmem:[%s598_s1 + $0xd0] sm:$0xff] }
   0xb   :  { %360 = vmatprep.subr.bf16.mxu1 %v406_v5  ;;  %v55_v46 = vld [vmem:[%s598_s1 + $0x148] sm:$0xff]  ;;  %v41_v48 = vld [vmem:[%s598_s1 + $0xd8] sm:$0xff]  ;;  %v12_v50 = vld [vmem:[%s597_s0] sm:$0x7]  ;;  %v340_v51 = vpack.c.bf16 %v23_v44, %v22_v42 }
   0xc   :  { %v367_v52 = vpack.c.bf16 %v55_v46, %v54_v45  ;;  %v24_v53 = vld [vmem:[%s598_s1 + $0x50] sm:$0xff]  ;;  %v13_v54 = vmul.f32 %v12_v50, %v12_v50 }
   0xd   :  { %333 = vmatpush3.bf16.msra.mxu0 %v332_v30 }
   0xe   :  { %362 = vmatpush3.bf16.msra.mxu1 %v361_v31  ;;  %335 = vmatprep.subr.bf16.mxu0 %v334_v33 }
   0xf   :  { %363 = vmatprep.subr.bf16.mxu1 %v406_v5 }
  0x11   :  { %337 = vmatpush3.bf16.msra.mxu0 %v336_v40 }
  0x12   :  { %365 = vmatpush3.bf16.msra.mxu1 %v364_v41 }
  0x13   :  { %7 = vsyncpa [#allocation3], 0  ;;  %339 = vmatprep.subr.bf16.mxu0 %v338_v43  ;;  %366 = vmatprep.subr.bf16.mxu1 %v406_v5  ;;  %v342_v55 = vpack.c.bf16 %v41_v48, %v40_v47  ;;  %v25_v56 = vld [vmem:[%s598_s1 + $0x58] sm:$0xff]  ;;  %v56_v57 = vld [vmem:[%s598_s1 + $0x150] sm:$0xff]  ;;  %v70_v61 = vrot.slane %v13_v54, %v69_v49  ;;  %v65_v15 = vsub.s32 0, %v506_v39  ;;  %v73_v16 = vsub.s32 2, %v506_v39 }
  0x14   :  { %v57_v58 = vld [vmem:[%s598_s1 + $0x158] sm:$0xff]  ;;  %v42_v59 = vld [vmem:[%s598_s1 + $0xe0] sm:$0xff]  ;;  %v43_v60 = vld [vmem:[%s598_s1 + $0xe8] sm:$0xff]  ;;  %v344_v62 = vpack.c.bf16 %v25_v56, %v24_v53  ;;  %vm219_vm1 = vcmask 57344  }
  0x15   :  { %341 = vmatpush3.bf16.msra.mxu0 %v340_v51  ;;  %v370_v63 = vpack.c.bf16 %v57_v58, %v56_v57  ;;  %v26_v0 = vld [vmem:[%s598_s1 + $0x60] sm:$0xff]  ;;  %v346_v1 = vpack.c.bf16 %v43_v60, %v42_v59  ;;  %v27_v2 = vld [vmem:[%s598_s1 + $0x68] sm:$0xff]  ;;  %v44_v6 = vld [vmem:[%s598_s1 + $0xf0] sm:$0xff]  ;;  %142 = vmatprep.mubr.f32.mxu0 %v70_v61  ;;  %v66_v19 = vrot.slane %v13_v54, %v65_v15 }
  0x16   :  { %368 = vmatpush3.bf16.msra.mxu1 %v367_v52  ;;  %343 = vmatprep.subr.bf16.mxu0 %v342_v55  ;;  %v58_v3 = vld [vmem:[%s598_s1 + $0x160] sm:$0xff]  ;;  %v59_v4 = vld [vmem:[%s598_s1 + $0x168] sm:$0xff]  ;;  %v45_v7 = vld [vmem:[%s598_s1 + $0xf8] sm:$0xff]  ;;  %v348_v8 = vpack.c.bf16 %v27_v2, %v26_v0  ;;  %v74_v20 = vrot.slane %v13_v54, %v73_v16 }
  0x17   :  { %369 = vmatprep.subr.bf16.mxu1 %v406_v5  ;;  %v373_v9 = vpack.c.bf16 %v59_v4, %v58_v3  ;;  %v28_v10 = vld [vmem:[%s598_s1 + $0x70] sm:$0xff]  ;;  %v350_v11 = vpack.c.bf16 %v45_v7, %v44_v6  ;;  %v29_v12 = vld [vmem:[%s598_s1 + $0x78] sm:$0xff] }
  0x18   :  { %v60_v13 = vld [vmem:[%s598_s1 + $0x170] sm:$0xff]  ;;  %v61_v14 = vld [vmem:[%s598_s1 + $0x178] sm:$0xff]  ;;  %v352_v17 = vpack.c.bf16 %v29_v12, %v28_v10  ;;  %s409_s1 = smov [#allocation2]  }
  0x19   :  { %345 = vmatpush3.bf16.msra.mxu0 %v344_v62  ;;  %v376_v18 = vpack.c.bf16 %v61_v14, %v60_v13  ;;  %s227_s22 = sshll.u32 %s409_s1, 4  ;;  %s228_s22 = int_to_ptr.vmem [resolvable:$true] %s227_s22 }
  0x1a   :  { %371 = vmatpush3.bf16.msra.mxu1 %v370_v63  ;;  %347 = vmatprep.subr.bf16.mxu0 %v346_v1  ;;  %s382_s23 = scalar_lea.vmem %s228_s22, 16  ;;  %s386_s0 = scalar_lea.vmem %s228_s22, 32 }
  0x1b   :  { %372 = vmatprep.subr.bf16.mxu1 %v406_v5  ;;  %p383_p0 = scmp.ne.s32.totalorder %s228_s22, %s382_s23  ;;  %p387_p1 = scmp.lt.s32.totalorder %s228_s22, %s228_s22 }
  0x1c   :  { %p388_p2 = scmp.lt.s32.totalorder %s386_s0, %s382_s23 }
  0x1d   :  { %349 = vmatpush3.bf16.msra.mxu0 %v348_v8 }
  0x1e   :  { %374 = vmatpush3.bf16.msra.mxu1 %v373_v9  ;;  %351 = vmatprep.subr.bf16.mxu0 %v350_v11  ;;  %p389_p3 = por %p388_p2, %p387_p1 }
  0x1f   :  { %375 = vmatprep.subr.bf16.mxu1 %v406_v5 }
  0x20   :  { %p390_p4 = pnand %p389_p3, %p383_p0 }
  0x21   :  { %353 = vmatpush3.bf16.msra.mxu0 %v352_v17 }
  0x22   :  { %377 = vmatpush3.bf16.msra.mxu1 %v376_v18 }
  0x24   :  { %143 = vmatmul.mubr.f32.vlgmr.msra.gmra.mrb[0].mxu0 %v66_v19 }
  0x25   :  { %320 = vmatmul.mubr.f32.vlgmr.msra.gmra.mrb[0].mxu1 %v74_v20 }
  0xf7   :  { %v267_v21 = vpop.f32.mrb[0].mxu0 }
  0xf8   :  { %v214_v22 = vpop.f32.mrb[0].mxu1  ;;  %v268_v23 = vpop.f32.mrb[1].mxu0 }
  0xf9   :  { %v321_v24 = vpop.f32.mrb[1].mxu1  ;;  %v269_v25 = vadd.f32 %v268_v23, %v267_v21 }
  0xfb   :  { %v215_v26 = vadd.f32 %v269_v25, %v214_v22 }
  0xfd   :  { %v218_v27 = vmul.f32 0.020833334, %v215_v26 }
  0xff   :  { %220 = vst.msk [vmem:[#allocation2] sm:$0x1] %vm219_vm1, %v218_v27 }
 0x100   :  { %393 = shalt.err (!%p390_p4)
}
 0x101   :  { %s394_s26 = scalar_lea.hbm %s599_s2, 16 }
 0x102   :  { %p395_p5 = scmp.ne.s32.totalorder %s599_s2, %s394_s26  ;;  %p398_p6 = scmp.lt.u32.totalorder %s394_s26, %s599_s2 }
 0x104   :  { %p400_p7 = pnand %p398_p6, %p395_p5 }
 0x106   :  { %403 = shalt.err (!%p400_p7)
}
 0x107   :  { %230 = dma.vmem_to_hbm [thread:$0]  %s228_s22, 16, %s599_s2, [#allocation3]  }
 0x108   :  { %404 = dma.done.wait [#allocation3], 16  }
 0x109   :  { %405 = vsyncadd [#allocation3], 4294967280 }
 0x10a   :  { %234 = vsyncpa [#allocation3], 1 }

</bundles_post_ra>
